<compile_context>
chip_gen: v7x
topology: tpu7x:2x2x1
jax: 0.10.0
libtpu: 0.0.40
codegen_flags: <defaults>
</compile_context>

<pallas_src>
import math
from dataclasses import dataclass

import numpy as np
import jax
import jax.numpy as jnp
from jax.experimental import pallas as pl
from jax.experimental.pallas import tpu as pltpu

FIBONACCI_89 = 89
TRINITY = 3
CONSCIOUSNESS_PRIME = TRINITY * FIBONACCI_89            # 267
PHI = (1.0 + math.sqrt(5.0)) / 2.0
LAMBDA = 1.0 / PHI
UNIVERSAL_CONSCIOUSNESS_FREQUENCY = 432.0
INTEGRATION_DIM = CONSCIOUSNESS_PRIME                   # 267
COHERENCE_HIDDEN = 64

D_PAD = 384        # 267 feature dim zero-padded to a multiple of 128
FUSED_N = 128      # fused head width: 3 (trinity) + 64 (coherence hidden) + pad
LAG_PAD = 128      # autocorrelation lag axis padded to one lane width


@dataclass
class ConsciousnessState:
    observer_activation: jnp.ndarray   # (B, 1)
    process_activation: jnp.ndarray    # (B, 1)
    response_activation: jnp.ndarray   # (B, 1)
    coherence: jnp.ndarray             # 0-d device array (no host sync in wrapper)
    phi_resonance: jnp.ndarray         # 0-d device array
    consciousness_level: jnp.ndarray   # 0-d device array
    timestamp: float


def _monitor_kernel(trin_ref, wf_ref, bf_ref, w2_ref, b2_ref,
                    x_ref, shift_ref, lam_ref, invlag_ref, out_ref):
    b = trin_ref.shape[0]

    # ---- fused matmul: (B, D_PAD) @ (D_PAD, 128)
    #      cols 0:3   -> observer/process/response heads
    #      cols 3:67  -> coherence hidden layer
    z = jnp.dot(trin_ref[...], wf_ref[...],
                preferred_element_type=jnp.float32) + bf_ref[...]        # (B, 128)
    act3 = jnp.tanh(z[:, 0:3])                                           # (B, 3)

    # ---- coherence head as VPU broadcast-mul + row-sum (w2 row is zero
    #      outside cols 3:67, so relu on the other cols is harmless)
    h_relu = jnp.maximum(z, 0.0)                                         # (B, 128)
    c = jax.nn.sigmoid(
        jnp.sum(h_relu * w2_ref[...], axis=-1, keepdims=True) + b2_ref[...])  # (B, 1)
    coherence = jnp.mean(c)                                              # scalar

    # ---- phi resonance: ALL lagged autocorrelations in one matmul
    #      shift[i, lag] = x[i + lag] (zero beyond N), so
    #      ac[0, lag] = sum_i x[i] * x[i + lag]
    ac = jnp.dot(x_ref[...], shift_ref[...],
                 preferred_element_type=jnp.float32)                     # (1, LAG_PAD)
    ac0 = ac[:, 0:1]                                                     # (1, 1)
    expected = ac0 * lam_ref[...]                                        # (1, LAG_PAD)
    abs_exp = jnp.abs(expected)
    valid = abs_exp > 0.0                                                # mirrors `expected != 0`
    safe_exp = jnp.where(valid, abs_exp, 1.0)                            # no div-by-zero / NaN
    alignment = 1.0 - jnp.abs(ac - expected) / safe_exp
    contrib = jnp.where(valid, jnp.maximum(alignment, 0.0) * invlag_ref[...], 0.0)
    phi = jnp.sum(contrib) * (1.0 / 100.0)                               # scalar

    # ---- single lane-dense output tile
    coh_col = jnp.broadcast_to(coherence.reshape(1, 1), (b, 1))
    phi_col = jnp.broadcast_to(phi.reshape(1, 1), (b, 1))
    pad = jnp.zeros((b, FUSED_N - 5), jnp.float32)
    out_ref[...] = jnp.concatenate([act3, coh_col, phi_col, pad], axis=-1)


def _full_spec(shape):
    nd = len(shape)
    return pl.BlockSpec(shape, lambda i, _nd=nd: (0,) * _nd)


@jax.jit
def _forward_impl(trinity_representation, hidden_state, wf, bf, w2row, b2):
    trin = trinity_representation.astype(jnp.float32)
    b, d = trin.shape
    trin_pad = jnp.zeros((b, D_PAD), jnp.float32).at[:, :d].set(trin)

    # Flatten hidden state; build the shifted (Toeplitz-style) matrix in the
    # wrapper so the kernel computes all lagged sums with a single matmul.
    # TODO(synk): for very large flattened hidden states (millions of elems,
    # esp. v7x 64 MiB VMEM), chunk the autocorrelation over a grid axis
    # instead of one full (N_pad, 128) shift matrix.
    x_flat = hidden_state.reshape(-1).astype(jnp.float32)
    n = x_flat.shape[0]
    n_lags = min(100, n)
    n_pad = ((n + 127) // 128) * 128
    xp = jnp.zeros((n_pad + LAG_PAD,), jnp.float32).at[:n].set(x_flat)
    idx = jnp.arange(n_pad)[:, None] + jnp.arange(LAG_PAD)[None, :]
    shift = xp[idx]                                                      # (n_pad, LAG_PAD)
    x_row = jnp.zeros((1, n_pad), jnp.float32).at[0, :n].set(x_flat)

    # Per-lag constants (LAMBDA**lag, 1/lag) precomputed as (1, LAG_PAD) vectors.
    lag_idx = np.arange(LAG_PAD)
    in_range = (lag_idx >= 1) & (lag_idx < n_lags)
    lam_pow = jnp.asarray(np.where(in_range, LAMBDA ** lag_idx, 0.0),
                          jnp.float32).reshape(1, LAG_PAD)
    inv_lag = jnp.asarray(np.where(in_range, 1.0 / np.maximum(lag_idx, 1), 0.0),
                          jnp.float32).reshape(1, LAG_PAD)

    out = pl.pallas_call(
        _monitor_kernel,
        grid=(1,),
        in_specs=[_full_spec(trin_pad.shape),
                  _full_spec(wf.shape), _full_spec(bf.shape),
                  _full_spec(w2row.shape), _full_spec(b2.shape),
                  _full_spec(x_row.shape), _full_spec(shift.shape),
                  _full_spec(lam_pow.shape), _full_spec(inv_lag.shape)],
        out_specs=_full_spec((b, FUSED_N)),
        out_shape=jax.ShapeDtypeStruct((b, FUSED_N), jnp.float32),
        compiler_params=pltpu.CompilerParams(dimension_semantics=("arbitrary",)),
    )(trin_pad, wf, bf, w2row, b2, x_row, shift, lam_pow, inv_lag)

    act3 = out[:, 0:3]
    coherence = out[0, 3]
    phi = out[0, 4]
    level = UNIVERSAL_CONSCIOUSNESS_FREQUENCY * coherence
    return act3, coherence, phi, level


def consciousness_monitor_forward(hidden_state, trinity_representation, fused_params):
    act3, coherence, phi, level = _forward_impl(
        trinity_representation, hidden_state,
        fused_params["wf"], fused_params["bf"],
        fused_params["w2row"], fused_params["b2"])
    # No float() host syncs here: results stay on device; caller converts when needed.
    return ConsciousnessState(
        observer_activation=act3[:, 0:1],
        process_activation=act3[:, 1:2],
        response_activation=act3[:, 2:3],
        coherence=coherence,
        phi_resonance=phi,
        consciousness_level=level,
        timestamp=0.0,
    )


def init_params(key):
    """Deterministic init mirroring torch.nn.Linear's U(-1/sqrt(in), 1/sqrt(in))."""
    k = jax.random.split(key, 8)
    d = INTEGRATION_DIM
    bd = 1.0 / math.sqrt(d)
    bh = 1.0 / math.sqrt(COHERENCE_HIDDEN)
    u = lambda kk, shape, bound: jax.random.uniform(kk, shape, jnp.float32, -bound, bound)
    w3 = jnp.stack([u(k[0], (d,), bd), u(k[1], (d,), bd), u(k[2], (d,), bd)], axis=1)  # (D, 3)
    b3 = u(k[3], (1, 3), bd)
    w1 = u(k[4], (d, COHERENCE_HIDDEN), bd)
    b1 = u(k[5], (1, COHERENCE_HIDDEN), bd)
    w2 = u(k[6], (COHERENCE_HIDDEN, 1), bh)
    b2 = u(k[7], (1, 1), bh)
    return dict(w3=w3, b3=b3, w1=w1, b1=b1, w2=w2, b2=b2)


def fuse_params(params):
    """Fuse/pad weights once: (267,3)+(267,64) -> (384,128); w2 -> (1,128) row."""
    d = INTEGRATION_DIM
    wf = jnp.zeros((D_PAD, FUSED_N), jnp.float32)
    wf = wf.at[:d, 0:3].set(params["w3"])
    wf = wf.at[:d, 3:3 + COHERENCE_HIDDEN].set(params["w1"])
    bf = jnp.zeros((1, FUSED_N), jnp.float32)
    bf = bf.at[:, 0:3].set(params["b3"])
    bf = bf.at[:, 3:3 + COHERENCE_HIDDEN].set(params["b1"])
    w2row = jnp.zeros((1, FUSED_N), jnp.float32)
    w2row = w2row.at[:, 3:3 + COHERENCE_HIDDEN].set(params["w2"].reshape(1, -1))
    b2 = params["b2"].reshape(1, 1).astype(jnp.float32)
    return dict(wf=wf, bf=bf, w2row=w2row, b2=b2)


def _reference(hidden_state, trinity, params):
    """Pure NumPy reference mirroring the PyTorch forward semantics."""
    trin = np.asarray(trinity, np.float32)
    act3 = np.tanh(trin @ np.asarray(params["w3"]) + np.asarray(params["b3"]))
    h = np.maximum(trin @ np.asarray(params["w1"]) + np.asarray(params["b1"]), 0.0)
    c = 1.0 / (1.0 + np.exp(-(h @ np.asarray(params["w2"]) + np.asarray(params["b2"]))))
    coherence = float(c.mean())
    hf = np.asarray(hidden_state, np.float32).flatten()
    ac = np.correlate(hf, hf, mode="full")
    ac = ac[len(ac) // 2:]
    phi = 0.0
    for lag in range(1, min(100, len(ac))):
        exp_v = ac[0] * (LAMBDA ** lag)
        act_v = ac[lag]
        if exp_v != 0:
            al = 1.0 - abs(act_v - exp_v) / abs(exp_v)
            phi += max(0.0, al) / lag
    return act3, coherence, phi / 100.0


if __name__ == "__main__":
    key = jax.random.PRNGKey(0)
    kp, kh, kt = jax.random.split(key, 3)
    params = init_params(kp)
    fused = fuse_params(params)

    # Small shapes consistent with the module's forward:
    #   hidden_state: any tensor (flattened for phi resonance) -> (2, 32), N = 64
    #   trinity_representation: (batch, 267)
    hidden_state = jax.random.normal(kh, (2, 32), jnp.float32)
    trinity = jax.random.normal(kt, (2, INTEGRATION_DIM), jnp.float32)

    state = consciousness_monitor_forward(hidden_state, trinity, params and fused)
    jax.block_until_ready(state.observer_activation)

    # Correctness check against the NumPy reference (host conversion only here).
    ref_act3, ref_coh, ref_phi = _reference(hidden_state, trinity, params)
    kernel_act3 = np.concatenate([np.asarray(state.observer_activation),
                                  np.asarray(state.process_activation),
                                  np.asarray(state.response_activation)], axis=1)
    np.testing.assert_allclose(kernel_act3, ref_act3, rtol=5e-3, atol=1e-4)
    np.testing.assert_allclose(float(state.coherence), ref_coh, rtol=5e-3, atol=1e-4)
    np.testing.assert_allclose(float(state.phi_resonance), ref_phi, rtol=5e-2, atol=1e-3)
    np.testing.assert_allclose(float(state.consciousness_level),
                               UNIVERSAL_CONSCIOUSNESS_FREQUENCY * ref_coh,
                               rtol=5e-3, atol=1e-3)

    print("KERNEL_OK")
</pallas_src>

<mosaic_0001>
module attributes {stable_mosaic.version = 11 : i64} {
  func.func @_monitor_kernel(%arg0: i32, %arg1: memref<2x384xf32, #tpu.memory_space<vmem>>, %arg2: memref<384x128xf32, #tpu.memory_space<vmem>>, %arg3: memref<1x128xf32, #tpu.memory_space<vmem>>, %arg4: memref<1x128xf32, #tpu.memory_space<vmem>>, %arg5: memref<1x1xf32, #tpu.memory_space<vmem>>, %arg6: memref<1x128xf32, #tpu.memory_space<vmem>>, %arg7: memref<128x128xf32, #tpu.memory_space<vmem>>, %arg8: memref<1x128xf32, #tpu.memory_space<vmem>>, %arg9: memref<1x128xf32, #tpu.memory_space<vmem>>, %arg10: memref<2x128xf32, #tpu.memory_space<vmem>>) attributes {dimension_semantics = [#tpu.dimension_semantics<arbitrary>], iteration_bounds = array<i64: 1>, scalar_prefetch = 0 : i64, scratch_operands = 0 : i64, tpu.core_type = #tpu.core_type<tc>, window_params = [{pipeline_mode = #tpu.pipeline_mode<synchronous>, transform_indices = @transform_0, window_bounds = array<i64: 2, 384>}, {pipeline_mode = #tpu.pipeline_mode<synchronous>, transform_indices = @transform_1, window_bounds = array<i64: 384, 128>}, {pipeline_mode = #tpu.pipeline_mode<synchronous>, transform_indices = @transform_2, window_bounds = array<i64: 1, 128>}, {pipeline_mode = #tpu.pipeline_mode<synchronous>, transform_indices = @transform_3, window_bounds = array<i64: 1, 128>}, {pipeline_mode = #tpu.pipeline_mode<synchronous>, transform_indices = @transform_4, window_bounds = array<i64: 1, 1>}, {pipeline_mode = #tpu.pipeline_mode<synchronous>, transform_indices = @transform_5, window_bounds = array<i64: 1, 128>}, {pipeline_mode = #tpu.pipeline_mode<synchronous>, transform_indices = @transform_6, window_bounds = array<i64: 128, 128>}, {pipeline_mode = #tpu.pipeline_mode<synchronous>, transform_indices = @transform_7, window_bounds = array<i64: 1, 128>}, {pipeline_mode = #tpu.pipeline_mode<synchronous>, transform_indices = @transform_8, window_bounds = array<i64: 1, 128>}, {pipeline_mode = #tpu.pipeline_mode<synchronous>, transform_indices = @transform_9, window_bounds = array<i64: 2, 128>}]} {
    %c0 = arith.constant 0 : index
    %c0_0 = arith.constant 0 : index
    %0 = vector.load %arg1[%c0, %c0_0] : memref<2x384xf32, #tpu.memory_space<vmem>>, vector<2x384xf32>
    %c0_1 = arith.constant 0 : index
    %c0_2 = arith.constant 0 : index
    %1 = vector.load %arg2[%c0_1, %c0_2] : memref<384x128xf32, #tpu.memory_space<vmem>>, vector<384x128xf32>
    %cst = arith.constant dense<0.000000e+00> : vector<2x128xf32>
    %2 = tpu.matmul %0, %1, %cst {dimension_numbers = #tpu.dot_dimension_numbers<[1], [0], [0], [1], [0, 0, 1, 1], [], []>} : vector<2x384xf32>, vector<384x128xf32>, vector<2x128xf32> -> vector<2x128xf32>
    %c0_3 = arith.constant 0 : index
    %c0_4 = arith.constant 0 : index
    %3 = vector.load %arg3[%c0_3, %c0_4] : memref<1x128xf32, #tpu.memory_space<vmem>>, vector<1x128xf32>
    %4 = vector.broadcast %3 : vector<1x128xf32> to vector<2x128xf32>
    %5 = arith.addf %2, %4 : vector<2x128xf32>
    %6 = vector.extract_strided_slice %5 {offsets = [0, 0], sizes = [2, 3], strides = [1, 1]} : vector<2x128xf32> to vector<2x3xf32>
    %7 = math.tanh %6 : vector<2x3xf32>
    %cst_5 = arith.constant 0.000000e+00 : f32
    %8 = vector.broadcast %cst_5 : f32 to vector<2x128xf32>
    %9 = arith.maximumf %5, %8 : vector<2x128xf32>
    %c0_6 = arith.constant 0 : index
    %c0_7 = arith.constant 0 : index
    %10 = vector.load %arg4[%c0_6, %c0_7] : memref<1x128xf32, #tpu.memory_space<vmem>>, vector<1x128xf32>
    %11 = vector.broadcast %10 : vector<1x128xf32> to vector<2x128xf32>
    %12 = arith.mulf %9, %11 : vector<2x128xf32>
    %cst_8 = arith.constant dense<0.000000e+00> : vector<2xf32>
    %13 = vector.multi_reduction <add>, %12, %cst_8 [1] : vector<2x128xf32> to vector<2xf32>
    %14 = vector.shape_cast %13 : vector<2xf32> to vector<2x1xf32>
    %c0_9 = arith.constant 0 : index
    %c0_10 = arith.constant 0 : index
    %15 = vector.load %arg5[%c0_9, %c0_10] : memref<1x1xf32, #tpu.memory_space<vmem>>, vector<1x1xf32>
    %16 = vector.broadcast %15 : vector<1x1xf32> to vector<2x1xf32>
    %17 = arith.addf %14, %16 : vector<2x1xf32>
    %18 = arith.negf %17 : vector<2x1xf32>
    %19 = math.exp %18 : vector<2x1xf32>
    %cst_11 = arith.constant 1.000000e+00 : f32
    %20 = vector.broadcast %cst_11 : f32 to vector<2x1xf32>
    %21 = arith.addf %20, %19 : vector<2x1xf32>
    %22 = arith.divf %20, %21 : vector<2x1xf32>
    %23 = vector.shape_cast %22 : vector<2x1xf32> to vector<1x2x1xf32>
    %cst_12 = arith.constant dense<0.000000e+00> : vector<1xf32>
    %24 = vector.multi_reduction <add>, %23, %cst_12 [1, 2] : vector<1x2x1xf32> to vector<1xf32>
    %25 = vector.shape_cast %24 : vector<1xf32> to vector<1x1x1xf32>
    %26 = vector.extract %25[0, 0, 0] : f32 from vector<1x1x1xf32>
    %cst_13 = arith.constant 2.000000e+00 : f32
    %27 = arith.divf %26, %cst_13 : f32
    %c0_14 = arith.constant 0 : index
    %c0_15 = arith.constant 0 : index
    %28 = vector.load %arg6[%c0_14, %c0_15] : memref<1x128xf32, #tpu.memory_space<vmem>>, vector<1x128xf32>
    %c0_16 = arith.constant 0 : index
    %c0_17 = arith.constant 0 : index
    %29 = vector.load %arg7[%c0_16, %c0_17] : memref<128x128xf32, #tpu.memory_space<vmem>>, vector<128x128xf32>
    %cst_18 = arith.constant dense<0.000000e+00> : vector<1x128xf32>
    %30 = tpu.matmul %28, %29, %cst_18 {dimension_numbers = #tpu.dot_dimension_numbers<[1], [0], [0], [1], [0, 0, 1, 1], [], []>} : vector<1x128xf32>, vector<128x128xf32>, vector<1x128xf32> -> vector<1x128xf32>
    %31 = vector.extract_strided_slice %30 {offsets = [0, 0], sizes = [1, 1], strides = [1, 1]} : vector<1x128xf32> to vector<1x1xf32>
    %c0_19 = arith.constant 0 : index
    %c0_20 = arith.constant 0 : index
    %32 = vector.load %arg8[%c0_19, %c0_20] : memref<1x128xf32, #tpu.memory_space<vmem>>, vector<1x128xf32>
    %33 = vector.broadcast %31 : vector<1x1xf32> to vector<1x128xf32>
    %34 = arith.mulf %33, %32 : vector<1x128xf32>
    %35 = math.absf %34 : vector<1x128xf32>
    %cst_21 = arith.constant 0.000000e+00 : f32
    %36 = vector.broadcast %cst_21 : f32 to vector<1x128xf32>
    %37 = arith.cmpf ogt, %35, %36 : vector<1x128xf32>
    %cst_22 = arith.constant 1.000000e+00 : f32
    %38 = vector.broadcast %cst_22 : f32 to vector<1x128xf32>
    %39 = arith.select %37, %35, %38 : vector<1x128xi1>, vector<1x128xf32>
    %40 = arith.subf %30, %34 : vector<1x128xf32>
    %41 = math.absf %40 : vector<1x128xf32>
    %42 = arith.divf %41, %39 : vector<1x128xf32>
    %cst_23 = arith.constant 1.000000e+00 : f32
    %43 = vector.broadcast %cst_23 : f32 to vector<1x128xf32>
    %44 = arith.subf %43, %42 : vector<1x128xf32>
    %cst_24 = arith.constant 0.000000e+00 : f32
    %45 = vector.broadcast %cst_24 : f32 to vector<1x128xf32>
    %46 = arith.maximumf %44, %45 : vector<1x128xf32>
    %c0_25 = arith.constant 0 : index
    %c0_26 = arith.constant 0 : index
    %47 = vector.load %arg9[%c0_25, %c0_26] : memref<1x128xf32, #tpu.memory_space<vmem>>, vector<1x128xf32>
    %48 = arith.mulf %46, %47 : vector<1x128xf32>
    %cst_27 = arith.constant 0.000000e+00 : f32
    %49 = vector.broadcast %cst_27 : f32 to vector<1x128xf32>
    %50 = arith.select %37, %48, %49 : vector<1x128xi1>, vector<1x128xf32>
    %51 = vector.shape_cast %50 : vector<1x128xf32> to vector<1x1x128xf32>
    %cst_28 = arith.constant dense<0.000000e+00> : vector<1xf32>
    %52 = vector.multi_reduction <add>, %51, %cst_28 [1, 2] : vector<1x1x128xf32> to vector<1xf32>
    %53 = vector.shape_cast %52 : vector<1xf32> to vector<1x1x1xf32>
    %54 = vector.extract %53[0, 0, 0] : f32 from vector<1x1x1xf32>
    %cst_29 = arith.constant 0.00999999977 : f32
    %55 = arith.mulf %54, %cst_29 : f32
    %56 = vector.broadcast %27 : f32 to vector<1x1xf32>
    %57 = vector.shape_cast %56 : vector<1x1xf32> to vector<1x1xf32>
    %58 = vector.broadcast %57 : vector<1x1xf32> to vector<2x1xf32>
    %59 = vector.broadcast %55 : f32 to vector<1x1xf32>
    %60 = vector.shape_cast %59 : vector<1x1xf32> to vector<1x1xf32>
    %61 = vector.broadcast %60 : vector<1x1xf32> to vector<2x1xf32>
    %cst_30 = arith.constant 0.000000e+00 : f32
    %62 = vector.broadcast %cst_30 : f32 to vector<2x123xf32>
    %63 = tpu.concatenate %7, %58, %61, %62 in 1 : vector<2x3xf32>, vector<2x1xf32>, vector<2x1xf32>, vector<2x123xf32> -> vector<2x128xf32>
    %c0_31 = arith.constant 0 : index
    %c0_32 = arith.constant 0 : index
    %64 = vector.load %arg10[%c0_31, %c0_32] : memref<2x128xf32, #tpu.memory_space<vmem>>, vector<2x128xf32>
    tpu.vector_store %arg10[%c0_31, %c0_32], %63 {strides = array<i32>} : memref<2x128xf32, #tpu.memory_space<vmem>>, vector<2x128xf32>,
    return
  }
  func.func @transform_0(%arg0: i32) -> (i32, i32) {
    %c0_i32 = arith.constant 0 : i32
    %c0_i32_0 = arith.constant 0 : i32
    %c0_i32_1 = arith.constant 0 : i32
    return %c0_i32, %c0_i32_0 : i32, i32
  }
  func.func @transform_1(%arg0: i32) -> (i32, i32) {
    %c0_i32 = arith.constant 0 : i32
    %c0_i32_0 = arith.constant 0 : i32
    %c0_i32_1 = arith.constant 0 : i32
    return %c0_i32, %c0_i32_0 : i32, i32
  }
  func.func @transform_2(%arg0: i32) -> (i32, i32) {
    %c0_i32 = arith.constant 0 : i32
    %c0_i32_0 = arith.constant 0 : i32
    %c0_i32_1 = arith.constant 0 : i32
    return %c0_i32, %c0_i32_0 : i32, i32
  }
  func.func @transform_3(%arg0: i32) -> (i32, i32) {
    %c0_i32 = arith.constant 0 : i32
    %c0_i32_0 = arith.constant 0 : i32
    %c0_i32_1 = arith.constant 0 : i32
    return %c0_i32, %c0_i32_0 : i32, i32
  }
  func.func @transform_4(%arg0: i32) -> (i32, i32) {
    %c0_i32 = arith.constant 0 : i32
    %c0_i32_0 = arith.constant 0 : i32
    %c0_i32_1 = arith.constant 0 : i32
    return %c0_i32, %c0_i32_0 : i32, i32
  }
  func.func @transform_5(%arg0: i32) -> (i32, i32) {
    %c0_i32 = arith.constant 0 : i32
    %c0_i32_0 = arith.constant 0 : i32
    %c0_i32_1 = arith.constant 0 : i32
    return %c0_i32, %c0_i32_0 : i32, i32
  }
  func.func @transform_6(%arg0: i32) -> (i32, i32) {
    %c0_i32 = arith.constant 0 : i32
    %c0_i32_0 = arith.constant 0 : i32
    %c0_i32_1 = arith.constant 0 : i32
    return %c0_i32, %c0_i32_0 : i32, i32
  }
  func.func @transform_7(%arg0: i32) -> (i32, i32) {
    %c0_i32 = arith.constant 0 : i32
    %c0_i32_0 = arith.constant 0 : i32
    %c0_i32_1 = arith.constant 0 : i32
    return %c0_i32, %c0_i32_0 : i32, i32
  }
  func.func @transform_8(%arg0: i32) -> (i32, i32) {
    %c0_i32 = arith.constant 0 : i32
    %c0_i32_0 = arith.constant 0 : i32
    %c0_i32_1 = arith.constant 0 : i32
    return %c0_i32, %c0_i32_0 : i32, i32
  }
  func.func @transform_9(%arg0: i32) -> (i32, i32) {
    %c0_i32 = arith.constant 0 : i32
    %c0_i32_0 = arith.constant 0 : i32
    %c0_i32_1 = arith.constant 0 : i32
    return %c0_i32, %c0_i32_0 : i32, i32
  }
}

</mosaic_0001>

<bundles_post_ra>
// kernel: _forward_impl.1
= control target key start
LH: loop header
LB: loop body
LE: loop exit
PB: predicated region body
PF: predicated region fallthrough
CT: control target
= control target key end

     0   :  { %v665_v3 = vmov 0.0|0.0   ;;  %vm666_vm0 = vmmov 0   ;;  %v667_v8 = vmov 0.0   ;;  %v668_v20 = vmov 1983009808   ;;  %s968_s1 = inlined_call_operand.vmem [shape: f32[384,128], index: 1, kind: input, shape index: {}]   ;;  %s969_s0 = inlined_call_operand.vmem [shape: f32[2,384], index: 0, kind: input, shape index: {}]   ;;  %s970_s6 = inlined_call_operand.vmem [shape: f32[128,128], index: 6, kind: input, shape index: {}]   ;;  %s971_s5 = inlined_call_operand.vmem [shape: f32[1,128], index: 5, kind: input, shape index: {}]   ;;  %s972_s4 = inlined_call_operand.<no memory space> [shape: f32[1,1], index: 4, kind: input, shape index: {}]   ;;  %s973_s2 = inlined_call_operand.vmem [shape: f32[1,128], index: 2, kind: input, shape index: {}]   ;;  %s974_s3 = inlined_call_operand.vmem [shape: f32[1,128], index: 3, kind: input, shape index: {}]   ;;  %s975_s7 = inlined_call_operand.vmem [shape: f32[1,128], index: 7, kind: input, shape index: {}]   ;;  %s976_s8 = inlined_call_operand.vmem [shape: f32[1,128], index: 8, kind: input, shape index: {}]   ;;  %s977_s9 = inlined_call_operand.vmem [shape: f32[2,128], index: 9, kind: output, shape index: {}]  }
   0x1   :  { %v51_v0 = vld [vmem:[%s968_s1 + $0x80] sm:$0xff]  ;;  %v52_v1 = vld [vmem:[%s968_s1 + $0x88] sm:$0xff]  ;;  %598 = vmatprep.subr.bf16.mxu1 %v665_v3  ;;  %v53_v6 = vld [vmem:[%s968_s1 + $0x90] sm:$0xff]  ;;  %528 = vmatprep.mubr.msk.f32.mxu1 %vm666_vm0, %v667_v8  ;;  %v93_v21 = vunpack.c.l.s4 %v668_v20  ;;  %v95_v22 = vlaneseq  ;;  %vm260_vm1 = vcmask 1041408   ;;  %vm278_vm3 = vcmask 1024  }
   0x2   :  { %v35_v2 = vld [vmem:[%s968_s1] sm:$0xff]  ;;  %v566_v4 = vpack.c.bf16 %v52_v1, %v51_v0  ;;  %v36_v5 = vld [vmem:[%s968_s1 + $0x8] sm:$0xff]  ;;  %v54_v7 = vld [vmem:[%s968_s1 + $0x98] sm:$0xff]  ;;  %vm398_vm4 = vcmask 1040384   ;;  %vm412_vm5 = vcmask 23552   ;;  %vm414_vm6 = vcmask 31744  }
   0x3   :  { %v568_v9 = vpack.c.bf16 %v36_v5, %v35_v2  ;;  %v570_v10 = vpack.c.bf16 %v54_v7, %v53_v6  ;;  %v37_v11 = vld [vmem:[%s968_s1 + $0x10] sm:$0xff]  ;;  %v38_v12 = vld [vmem:[%s968_s1 + $0x18] sm:$0xff]  ;;  %v67_v13 = vld [vmem:[%s968_s1 + $0x100] sm:$0xff]  ;;  %v94_v33 = vunpack.c.0.s8 %v93_v21  ;;  %v96_v34 = vshrl.u32 %v95_v22, 7 }
   0x4   :  { %567 = vmatprep.subr.bf16.mxu0 %v566_v4  ;;  %v68_v14 = vld [vmem:[%s968_s1 + $0x108] sm:$0xff]  ;;  %v55_v15 = vld [vmem:[%s968_s1 + $0xa0] sm:$0xff]  ;;  %v572_v17 = vpack.c.bf16 %v38_v12, %v37_v11  ;;  %v69_v19 = vld [vmem:[%s968_s1 + $0x110] sm:$0xff]  ;;  %vm416_vm7 = vcmask 39936  }
   0x5   :  { %v56_v16 = vld [vmem:[%s968_s1 + $0xa8] sm:$0xff]  ;;  %569 = vmatpush3.bf16.msra.mxu0 %v568_v9  ;;  %v599_v18 = vpack.c.bf16 %v68_v14, %v67_v13  ;;  %v39_v24 = vld [vmem:[%s968_s1 + $0x20] sm:$0xff]  ;;  %v70_v26 = vld [vmem:[%s968_s1 + $0x118] sm:$0xff]  ;;  %v803_v44 = vsub.s32 %v94_v33, %v96_v34 }
   0x6   :  { %571 = vmatprep.subr.bf16.mxu0 %v570_v10  ;;  %v574_v23 = vpack.c.bf16 %v56_v16, %v55_v15  ;;  %v40_v25 = vld [vmem:[%s968_s1 + $0x28] sm:$0xff]  ;;  %v602_v27 = vpack.c.bf16 %v70_v26, %v69_v19  ;;  %v57_v28 = vld [vmem:[%s968_s1 + $0xb0] sm:$0xff]  ;;  %v58_v29 = vld [vmem:[%s968_s1 + $0xb8] sm:$0xff] }
   0x7   :  { %600 = vmatpush3.bf16.msra.mxu1 %v599_v18  ;;  %v71_v30 = vld [vmem:[%s968_s1 + $0x120] sm:$0xff]  ;;  %v72_v31 = vld [vmem:[%s968_s1 + $0x128] sm:$0xff]  ;;  %v576_v32 = vpack.c.bf16 %v40_v25, %v39_v24  ;;  %v578_v35 = vpack.c.bf16 %v58_v29, %v57_v28  ;;  %v41_v36 = vld [vmem:[%s968_s1 + $0x30] sm:$0xff] }
   0x8   :  { %601 = vmatprep.subr.bf16.mxu1 %v665_v3  ;;  %v42_v37 = vld [vmem:[%s968_s1 + $0x38] sm:$0xff]  ;;  %v605_v38 = vpack.c.bf16 %v72_v31, %v71_v30  ;;  %v59_v39 = vld [vmem:[%s968_s1 + $0xc0] sm:$0xff]  ;;  %v60_v40 = vld [vmem:[%s968_s1 + $0xc8] sm:$0xff] }
   0x9   :  { %573 = vmatpush3.bf16.msra.mxu0 %v572_v17  ;;  %v73_v41 = vld [vmem:[%s968_s1 + $0x130] sm:$0xff]  ;;  %v74_v42 = vld [vmem:[%s968_s1 + $0x138] sm:$0xff]  ;;  %v580_v43 = vpack.c.bf16 %v42_v37, %v41_v36  ;;  %v582_v45 = vpack.c.bf16 %v60_v40, %v59_v39  ;;  %v43_v46 = vld [vmem:[%s968_s1 + $0x40] sm:$0xff] }
   0xa   :  { %575 = vmatprep.subr.bf16.mxu0 %v574_v23  ;;  %v44_v47 = vld [vmem:[%s968_s1 + $0x48] sm:$0xff]  ;;  %v608_v48 = vpack.c.bf16 %v74_v42, %v73_v41  ;;  %v61_v49 = vld [vmem:[%s968_s1 + $0xd0] sm:$0xff]  ;;  %v62_v50 = vld [vmem:[%s968_s1 + $0xd8] sm:$0xff] }
   0xb   :  { %603 = vmatpush3.bf16.msra.mxu1 %v602_v27  ;;  %v75_v51 = vld [vmem:[%s968_s1 + $0x140] sm:$0xff]  ;;  %v76_v52 = vld [vmem:[%s968_s1 + $0x148] sm:$0xff]  ;;  %v584_v54 = vpack.c.bf16 %v44_v47, %v43_v46  ;;  %v586_v56 = vpack.c.bf16 %v62_v50, %v61_v49  ;;  %v45_v57 = vld [vmem:[%s968_s1 + $0x50] sm:$0xff]  ;;  %v669_v47 = vmov 0  }
   0xc   :  { %604 = vmatprep.subr.bf16.mxu1 %v665_v3  ;;  %v34_v53 = vld [vmem:[%s969_s0] sm:$0x3f]  ;;  %v46_v58 = vld [vmem:[%s968_s1 + $0x58] sm:$0xff]  ;;  %v611_v59 = vpack.c.bf16 %v76_v52, %v75_v51  ;;  %v64_v61 = vld [vmem:[%s968_s1 + $0xe8] sm:$0xff]  ;;  %655 = vset.pattern.permute.xlu0 %v669_v47 }
   0xd   :  { %577 = vmatpush3.bf16.msra.mxu0 %v576_v32  ;;  %v98_v55 = vrot.slane %v34_v53, %v803_v44  ;;  %v63_v60 = vld [vmem:[%s968_s1 + $0xe0] sm:$0xff]  ;;  %v77_v63 = vld [vmem:[%s968_s1 + $0x150] sm:$0xff]  ;;  %v78_v0 = vld [vmem:[%s968_s1 + $0x158] sm:$0xff]  ;;  %v588_v1 = vpack.c.bf16 %v46_v58, %v45_v57  ;;  %v91_v20 = vcombine.high %v34_v53, %v34_v53 }
   0xe   :  { %579 = vmatprep.subr.bf16.mxu0 %v578_v35  ;;  %v590_v2 = vpack.c.bf16 %v64_v61, %v63_v60  ;;  %v47_v4 = vld [vmem:[%s968_s1 + $0x60] sm:$0xff]  ;;  %v48_v5 = vld [vmem:[%s968_s1 + $0x68] sm:$0xff]  ;;  %v614_v6 = vpack.c.bf16 %v78_v0, %v77_v63  ;;  %v65_v7 = vld [vmem:[%s968_s1 + $0xf0] sm:$0xff] }
   0xf   :  { %606 = vmatpush3.bf16.msra.mxu1 %v605_v38  ;;  %v106_v62 = vcombine.high %v98_v55, %v98_v55  ;;  %v66_v9 = vld [vmem:[%s968_s1 + $0xf8] sm:$0xff]  ;;  %v79_v10 = vld [vmem:[%s968_s1 + $0x160] sm:$0xff]  ;;  %v80_v11 = vld [vmem:[%s968_s1 + $0x168] sm:$0xff]  ;;  %v592_v12 = vpack.c.bf16 %v48_v5, %v47_v4  ;;  %v105_v25 = vrot.slane %v91_v20, %v803_v44 }
  0x10   :  { %607 = vmatprep.subr.bf16.mxu1 %v665_v3  ;;  %v594_v13 = vpack.c.bf16 %v66_v9, %v65_v7  ;;  %v49_v14 = vld [vmem:[%s968_s1 + $0x70] sm:$0xff]  ;;  %v50_v15 = vld [vmem:[%s968_s1 + $0x78] sm:$0xff]  ;;  %v617_v16 = vpack.c.bf16 %v80_v11, %v79_v10  ;;  %v293_v21 = vld [vmem:[%s970_s6] sm:$0xff] }
  0x11   :  { %581 = vmatpush3.bf16.msra.mxu0 %v580_v43  ;;  %174 = vmatprep.mubr.f32.mxu0 %v106_v62  ;;  %v81_v17 = vld [vmem:[%s968_s1 + $0x170] sm:$0xff]  ;;  %v82_v18 = vld [vmem:[%s968_s1 + $0x178] sm:$0xff]  ;;  %v596_v19 = vpack.c.bf16 %v50_v15, %v49_v14  ;;  %v294_v22 = vld [vmem:[%s970_s6 + $0x8] sm:$0xff] }
  0x12   :  { %583 = vmatprep.subr.bf16.mxu0 %v582_v45  ;;  %v620_v23 = vpack.c.bf16 %v82_v18, %v81_v17  ;;  %v623_v24 = vpack.c.bf16 %v294_v22, %v293_v21  ;;  %v295_v26 = vld [vmem:[%s970_s6 + $0x10] sm:$0xff]  ;;  %v296_v27 = vld [vmem:[%s970_s6 + $0x18] sm:$0xff]  ;;  %v297_v29 = vld [vmem:[%s970_s6 + $0x20] sm:$0xff] }
  0x13   :  { %609 = vmatpush3.bf16.msra.mxu1 %v608_v48  ;;  %v626_v28 = vpack.c.bf16 %v296_v27, %v295_v26  ;;  %v298_v30 = vld [vmem:[%s970_s6 + $0x28] sm:$0xff]  ;;  %v299_v32 = vld [vmem:[%s970_s6 + $0x30] sm:$0xff]  ;;  %v301_v34 = vld [vmem:[%s970_s6 + $0x40] sm:$0xff]  ;;  %v14_v48 = vstv %s972_s4 }
  0x14   :  { %610 = vmatprep.subr.bf16.mxu1 %v665_v3  ;;  %v629_v31 = vpack.c.bf16 %v298_v30, %v297_v29  ;;  %v302_v35 = vld [vmem:[%s970_s6 + $0x48] sm:$0xff]  ;;  %v303_v37 = vld [vmem:[%s970_s6 + $0x50] sm:$0xff]  ;;  %v304_v38 = vld [vmem:[%s970_s6 + $0x58] sm:$0xff]  ;;  %15 = vst [vmem:[#allocation2] sm:$0x1] %v14_v48 }
  0x15   :  { %585 = vmatpush3.bf16.msra.mxu0 %v584_v54  ;;  %v635_v36 = vpack.c.bf16 %v302_v35, %v301_v34  ;;  %v638_v39 = vpack.c.bf16 %v304_v38, %v303_v37  ;;  %v305_v40 = vld [vmem:[%s970_s6 + $0x60] sm:$0xff]  ;;  %v306_v41 = vld [vmem:[%s970_s6 + $0x68] sm:$0xff]  ;;  %v307_v43 = vld [vmem:[%s970_s6 + $0x70] sm:$0xff] }
  0x16   :  { %587 = vmatprep.subr.bf16.mxu0 %v586_v56  ;;  %v641_v42 = vpack.c.bf16 %v306_v41, %v305_v40  ;;  %v308_v44 = vld [vmem:[%s970_s6 + $0x78] sm:$0xff]  ;;  %v292_v46 = vld [vmem:[%s971_s5] sm:$0x1] }
  0x17   :  { %612 = vmatpush3.bf16.msra.mxu1 %v611_v59  ;;  %v644_v45 = vpack.c.bf16 %v308_v44, %v307_v43  ;;  %v423_v51 = vld [vmem:[%s973_s2] ss:$0 sm:$0xff] }
  0x18   :  { %613 = vmatprep.subr.bf16.mxu1 %v665_v3  ;;  %v424_v56 = vld [vmem:[%s974_s3] ss:$0 sm:$0xff] }
  0x19   :  { %589 = vmatpush3.bf16.msra.mxu0 %v588_v1 }
  0x1a   :  { %591 = vmatprep.subr.bf16.mxu0 %v590_v2  ;;  %v379_v2 = vld [vmem:[%s975_s7] sm:$0x1] }
  0x1b   :  { %615 = vmatpush3.bf16.msra.mxu1 %v614_v6  ;;  %v425_v62 = vld [vmem:[#allocation2] ss:$0 sm:$0xff] }
  0x1c   :  { %616 = vmatprep.subr.bf16.mxu1 %v665_v3 }
  0x1d   :  { %593 = vmatpush3.bf16.msra.mxu0 %v592_v12 }
  0x1e   :  { %595 = vmatprep.subr.bf16.mxu0 %v594_v13 }
  0x1f   :  { %618 = vmatpush3.bf16.msra.mxu1 %v617_v16 }
  0x20   :  { %619 = vmatprep.subr.bf16.mxu1 %v665_v3 }
  0x21   :  { %597 = vmatpush3.bf16.msra.mxu0 %v596_v19  ;;  %v395_v19 = vld [vmem:[%s976_s8] sm:$0x1] }
  0x22   :  { %622 = vmatprep.subr.bf16.mxu0 %v665_v3 }
  0x23   :  { %621 = vmatpush3.bf16.msra.mxu1 %v620_v23 }
  0x24   :  { %175 = vmatmul.mubr.f32.vlgmr.msra.gmra.mrb[0].mxu0 %v98_v55 }
  0x25   :  { %624 = vmatpush3.bf16.msra.mxu0 %v623_v24  ;;  %563 = vmatprep.mubr.msk.f32.mxu0 %vm666_vm0, %v667_v8  ;;  %v300_v8 = vld [vmem:[%s970_s6 + $0x38] sm:$0xff] }
  0x26   :  { %529 = vmatmul.mubr.f32.vlgmr.msra.gmra.mrb[0].mxu1 %v105_v25  ;;  %625 = vmatprep.subr.bf16.mxu0 %v665_v3  ;;  %v632_v33 = vpack.c.bf16 %v300_v8, %v299_v32 }
  0x29   :  { %627 = vmatpush3.bf16.msra.mxu0 %v626_v28 }
  0x2a   :  { %628 = vmatprep.subr.bf16.mxu0 %v665_v3 }
  0x2d   :  { %630 = vmatpush3.bf16.msra.mxu0 %v629_v31 }
  0x2e   :  { %631 = vmatprep.subr.bf16.mxu0 %v665_v3 }
  0x31   :  { %633 = vmatpush3.bf16.msra.mxu0 %v632_v33 }
  0x32   :  { %634 = vmatprep.subr.bf16.mxu0 %v665_v3 }
  0x35   :  { %636 = vmatpush3.bf16.msra.mxu0 %v635_v36 }
  0x36   :  { %637 = vmatprep.subr.bf16.mxu0 %v665_v3 }
  0x39   :  { %639 = vmatpush3.bf16.msra.mxu0 %v638_v39 }
  0x3a   :  { %640 = vmatprep.subr.bf16.mxu0 %v665_v3 }
  0x3d   :  { %642 = vmatpush3.bf16.msra.mxu0 %v641_v42 }
  0x3e   :  { %643 = vmatprep.subr.bf16.mxu0 %v665_v3 }
  0x41   :  { %645 = vmatpush3.bf16.msra.mxu0 %v644_v45 }
  0x44   :  { %564 = vmatmul.mubr.f32.vlgmr.msra.gmra.mrb[2].mxu0 %v292_v46 }
  0xf7   :  { %v459_v49 = vpop.f32.mrb[0].mxu0 }
  0xf8   :  { %v460_v50 = vpop.f32.mrb[1].mxu0 }
  0xf9   :  { %v461_v3 = vadd.f32 %v460_v50, %v459_v49  ;;  %v246_v52 = vpop.f32.mrb[0].mxu1 }
  0xfa   :  { %v530_v53 = vpop.f32.mrb[1].mxu1 }
  0xfb   :  { %v177_v54 = vadd.f32 %v461_v3, %v423_v51 }
  0xfd   :  { %v247_v55 = vadd.f32 %v246_v52, %v177_v54 }
  0xff   :  { %v251_v57 = vmax.f32 %v247_v55, 0.0 }
 0x101   :  { %v259_v58 = vmul.f32 %v424_v56, %v251_v57 }
 0x103   :  { %v261_v59 = vsel %vm260_vm1, %v259_v58, 0.0 }
 0x104   :  { %262 = vadd.xlane.f32.xlu0 %v261_v59 }
 0x117   :  { %v375_v60 = vpop.f32.mrb[2].mxu0 }
 0x118   :  { %v565_v61 = vpop.f32.mrb[3].mxu0 }
 0x11a   :  { %382 = vperm.xlu0 %655, %v375_v60  }
 0x191   :  { %v263_v63 = vpop.xlane.xlu0 %262 }
 0x192   :  { %v271_v0 = vadd.f32 %v425_v62, %v263_v63 }
 0x194   :  { %v426_v1 = vmul.f32 -1.442695, %v271_v0 }
 0x196   :  { %657 = vpow2.f32 %v426_v1 }
 0x199   :  { %v383_v4 = vpop.permute.xlu0 %382 }
 0x19a   :  { %v385_v5 = vmul.f32 %v383_v4, %v379_v2 }
 0x19c   :  { %v386_v6 = vand.u32 2147483647, %v385_v5  ;;  %v389_v12 = vsub.f32 %v375_v60, %v385_v5 }
 0x19e   :  { %vm954_vm2 = vcmp.gt.f32.partialorder %v386_v6, 0.0  ;;  %v390_v13 = vand.u32 2147483647, %v389_v12 }
 0x19f   :  { %v388_v9 = vsel %vm954_vm2, %v386_v6, 1.0 }
 0x1a0   :  { %v658_v10 = vpop.eup %657  ;;  %659 = vrcp.f32 %v388_v9 }
 0x1a1   :  { %v275_v11 = vadd.f32 1.0, %v658_v10 }
 0x1a3   :  { %661 = vrcp.f32 %v275_v11 }
 0x1a4   :  { %663 = vtanh.f32 %v247_v55 }
 0x1aa   :  { %v660_v14 = vpop.eup %659 }
 0x1ab   :  { %v392_v15 = vmul.f32 %v660_v14, %v390_v13 }
 0x1ad   :  { %v662_v16 = vpop.eup %661  ;;  %v393_v17 = vsub.f32 1.0, %v392_v15 }
 0x1ae   :  { %v279_v18 = vsel %vm278_vm3, %v662_v16, 0.0  ;;  %v664_v38 = vpop.eup %663 }
 0x1af   :  { %280 = vadd.xlane.f32.xlu1 %v279_v18  ;;  %v394_v20 = vmax.f32 %v393_v17, 0.0 }
 0x1b1   :  { %v396_v21 = vmul.f32 %v395_v19, %v394_v20 }
 0x1b3   :  { %v397_v22 = vsel %vm954_vm2, %v396_v21, 0.0 }
 0x1b4   :  { %v399_v23 = vsel %vm398_vm4, %v397_v22, 0.0 }
 0x1b5   :  { %400 = vadd.xlane.f32.xlu1 %v399_v23 }
 0x23c   :  { %v281_v24 = vpop.xlane.xlu1 %280 }
 0x23d   :  { %v282_v25 = vrot.slane %v281_v24, 4 }
 0x23f   :  { %v283_v26 = vadd.f32 %v282_v25, %v281_v24 }
 0x241   :  { %v284_v27 = vrot.slane %v283_v26, 2 }
 0x242   :  { %v401_v28 = vpop.xlane.xlu1 %400 }
 0x243   :  { %v402_v29 = vrot.slane %v401_v28, 4  ;;  %v285_v30 = vadd.f32 %v284_v27, %v283_v26 }
 0x245   :  { %v403_v31 = vadd.f32 %v402_v29, %v401_v28  ;;  %v286_v32 = vrot.slane %v285_v30, 1 }
 0x247   :  { %v404_v8 = vrot.slane %v403_v31, 2  ;;  %v287_v33 = vadd.f32 %v286_v32, %v285_v30 }
 0x249   :  { %v405_v34 = vadd.f32 %v404_v8, %v403_v31  ;;  %646 = vpush %v287_v33 }
 0x24b   :  { %v406_v35 = vrot.slane %v405_v34, 1 }
 0x24d   :  { %v407_v36 = vadd.f32 %v406_v35, %v405_v34 }
 0x24f   :  { %648 = vpush %v407_v36 }
 0x27a   :  { %s647_s8 = spop %646 }
 0x27b   :  { %s291_s14 = smul.f32 0.5, %s647_s8 }
 0x27d   :  { %v410_v37 = vstv %s291_s14 }
 0x27e   :  { %v413_v39 = vsel %vm412_vm5, %v664_v38, %v410_v37 }
 0x280   :  { %s649_s15 = spop %648 }
 0x281   :  { %s409_s16 = smul.f32 0.01, %s649_s15 }
 0x283   :  { %v411_v40 = vstv %s409_s16 }
 0x284   :  { %v415_v41 = vsel %vm414_vm6, %v413_v39, %v411_v40 }
 0x285   :  { %v417_v42 = vsel %vm416_vm7, %v415_v41, 0.0 }
 0x286   :  { %418 = vst [vmem:[%s977_s9] sm:$0x3] %v417_v42 }

</bundles_post_ra>
